<compile_context>
chip_gen: v7x
topology: tpu7x:2x2x1
jax: 0.10.0
libtpu: 0.0.40
codegen_flags: <defaults>
</compile_context>

<pallas_src>
import functools

import jax
import jax.numpy as jnp
from jax.experimental import pallas as pl
from jax.experimental.pallas import tpu as pltpu

_LANE = 128   # lane width (last dim)
_SUBLANE = 8  # sublane width (second-to-last dim)


def _round_up(x, m):
    return (x + m - 1) // m * m


def dqn_forward_kernel(x_ref, w1_ref, b1_ref, w2_ref, b2_ref, w3_ref, b3_ref, o_ref):
    """Fused 3-layer MLP on one batch tile: ReLU(ReLU(x@W1+b1)@W2+b2)@W3+b3.

    MXU matmuls accumulate in f32; bias-add + ReLU epilogues stay in f32
    (required on v5e, cheap everywhere).  If weights are bf16, activations are
    cast to bf16 only at the MXU inputs.
    """
    cdt = w1_ref.dtype  # compute dtype for MXU inputs (f32 or bf16)

    # Layer 1: Linear + ReLU
    h1 = jnp.dot(x_ref[...].astype(cdt), w1_ref[...],
                 preferred_element_type=jnp.float32)
    h1 = jnp.maximum(h1 + b1_ref[...], 0.0)

    # Layer 2: Linear + ReLU
    h2 = jnp.dot(h1.astype(cdt), w2_ref[...],
                 preferred_element_type=jnp.float32)
    h2 = jnp.maximum(h2 + b2_ref[...], 0.0)

    # Output head: Linear (no activation) -> Q-values (unpadded, A-wide store)
    q = jnp.dot(h2.astype(cdt), w3_ref[...],
                preferred_element_type=jnp.float32)
    o_ref[...] = (q + b3_ref[...]).astype(o_ref.dtype)


def prepare_dqn_params(w1, b1, w2, b2, w3, b3, *, compute_dtype=jnp.float32):
    """One-time parameter prep (hoisted out of the per-call path).

    Pads only the HIDDEN dim to a 128-lane multiple; padded weight rows/cols and
    bias columns are zero, so padded lanes stay exactly zero through ReLU and
    contribute nothing to the Q head (correctness preserved).  The state dim S
    and action dim A stay unpadded.  Weights may be cast to bf16 for single-pass
    MXU matmuls on v6e/v7x; biases stay f32 for the f32 epilogue.
    """
    S, H = w1.shape
    A = w3.shape[1]
    Hp = _round_up(H, _LANE)

    def pad2(a, rows, cols, dtype):
        out = jnp.zeros((rows, cols), dtype)
        return out.at[: a.shape[0], : a.shape[1]].set(a.astype(dtype))

    w1p = pad2(w1, S, Hp, compute_dtype)
    w2p = pad2(w2, Hp, Hp, compute_dtype)
    w3p = pad2(w3, Hp, A, compute_dtype)
    b1p = pad2(b1, 1, Hp, jnp.float32)
    b2p = pad2(b2, 1, Hp, jnp.float32)
    b3p = b3.astype(jnp.float32).reshape(1, A)
    return w1p, b1p, w2p, b2p, w3p, b3p


@functools.partial(jax.jit, static_argnames=("block_b", "core_parallel"))
def dqn_forward(x, w1p, b1p, w2p, b2p, w3p, b3p, *, block_b=2048, core_parallel=False):
    """Fused MLP forward.  x: [B, S] f32 -> [B, A] f32.

    Parameters must come from prepare_dqn_params (hidden dim pre-padded,
    optionally bf16).  block_b: batch tile (sweep 1024-4096 for large replay
    batches).  core_parallel: set True on v7x to shard the batch grid axis
    across both TensorCores.
    """
    B, S = x.shape
    Hp = w1p.shape[1]
    A = w3p.shape[1]

    # Batch tile: multiple of 8 sublanes, capped at the (rounded) batch size.
    TB = _round_up(min(block_b, _round_up(B, _SUBLANE)), _SUBLANE)
    Bp = _round_up(B, TB)
    n_blocks = Bp // TB

    # Only batch rows are (rarely) padded; the feature axis stays unpadded.
    xp = x if Bp == B else jnp.pad(x, ((0, Bp - B), (0, 0)))

    x_spec = pl.BlockSpec((TB, S), lambda i: (i, 0))     # S = full dim -> exempt from 128 rule
    o_spec = pl.BlockSpec((TB, A), lambda i: (i, 0))     # A = full dim -> unpadded store
    const = lambda shape: pl.BlockSpec(shape, lambda i: (0, 0))  # VMEM-resident params

    wdt_bytes = jnp.dtype(w1p.dtype).itemsize
    weight_bytes = (S * Hp + Hp * Hp + Hp * A) * wdt_bytes + (2 * Hp + A) * 4

    # Advisory cost estimate: bytes actually streamed / MXU flops actually done.
    cost = pl.CostEstimate(
        flops=2 * Bp * (S * Hp + Hp * Hp + Hp * A),
        transcendentals=0,
        bytes_accessed=Bp * (S + A) * 4 + weight_bytes,
    )

    # VMEM actually used: double-buffered x/o tiles, one resident weight copy
    # (constant index_map; counted x2 for safety), f32 intermediates, headroom.
    act_tiles = 2 * TB * (S + A) * 4
    interm = 3 * TB * Hp * 4
    vmem_limit = min(64 * 1024 * 1024,
                     2 * weight_bytes + act_tiles + interm + (8 << 20))

    dim_sem = (pltpu.CORE_PARALLEL,) if core_parallel else ("parallel",)

    out = pl.pallas_call(
        dqn_forward_kernel,
        out_shape=jax.ShapeDtypeStruct((Bp, A), jnp.float32),
        grid=(n_blocks,),
        in_specs=[
            x_spec,
            const((S, Hp)), const((1, Hp)),
            const((Hp, Hp)), const((1, Hp)),
            const((Hp, A)), const((1, A)),
        ],
        out_specs=o_spec,
        compiler_params=pltpu.CompilerParams(
            dimension_semantics=dim_sem,
            vmem_limit_bytes=vmem_limit,
        ),
        cost_estimate=cost,
    )(xp, w1p, b1p, w2p, b2p, w3p, b3p)

    return out if Bp == B else out[:B]


def init_dqn_params(key, state_size, hidden_size, action_size):
    """Deterministic PyTorch-style (Kaiming-uniform-ish) init; weights pre-transposed [in, out]."""
    def linear(k, fan_in, fan_out):
        kw, kb = jax.random.split(k)
        bound = 1.0 / jnp.sqrt(jnp.float32(fan_in))
        w = jax.random.uniform(kw, (fan_in, fan_out), jnp.float32, -bound, bound)
        b = jax.random.uniform(kb, (1, fan_out), jnp.float32, -bound, bound)
        return w, b

    k1, k2, k3 = jax.random.split(key, 3)
    w1, b1 = linear(k1, state_size, hidden_size)
    w2, b2 = linear(k2, hidden_size, hidden_size)
    w3, b3 = linear(k3, hidden_size, action_size)
    return w1, b1, w2, b2, w3, b3


def reference_forward(x, w1, b1, w2, b2, w3, b3):
    h1 = jnp.maximum(x @ w1 + b1, 0.0)
    h2 = jnp.maximum(h1 @ w2 + b2, 0.0)
    return h2 @ w3 + b3


if __name__ == "__main__":
    # Small shapes consistent with the module's forward (state vector -> Q values).
    batch = 2
    state_size = 8          # _adapt_layers picks this up from state.shape[1]
    hidden_size = 64        # module default
    action_size = 4         # discrete action head

    key = jax.random.PRNGKey(0)
    kx, kp = jax.random.split(key)
    x = jax.random.normal(kx, (batch, state_size), jnp.float32)
    raw_params = init_dqn_params(kp, state_size, hidden_size, action_size)

    # One-time param prep (padding + cast hoisted out of the per-call path).
    params_f32 = prepare_dqn_params(*raw_params, compute_dtype=jnp.float32)

    # Small-shape correctness run (f32 MXU inputs, tight tolerance).
    q = jax.block_until_ready(dqn_forward(x, *params_f32))
    ref = jax.block_until_ready(reference_forward(x, *raw_params))
    assert q.shape == (batch, action_size)
    assert jnp.allclose(q, ref, atol=1e-5, rtol=1e-5)

    # Replay-batch-sized run exercising multiple grid steps with resident weights.
    xb = jax.random.normal(kx, (4096, state_size), jnp.float32)
    qb = jax.block_until_ready(dqn_forward(xb, *params_f32, block_b=2048))
    refb = jax.block_until_ready(reference_forward(xb, *raw_params))
    assert qb.shape == (4096, action_size)
    assert jnp.allclose(qb, refb, atol=1e-4, rtol=1e-4)

    # bf16 MXU-input path (f32 accumulation / f32 epilogue) — recommended default
    # on v6e/v7x; Q-value accuracy loosens to ~1e-2 as expected.
    params_bf16 = prepare_dqn_params(*raw_params, compute_dtype=jnp.bfloat16)
    qh = jax.block_until_ready(dqn_forward(xb, *params_bf16, block_b=2048))
    assert qh.shape == (4096, action_size)
    assert jnp.allclose(qh, refb, atol=7e-2, rtol=7e-2)

    # On v7x, call dqn_forward(..., core_parallel=True) to shard the batch grid
    # axis across both TensorCores (pltpu.CORE_PARALLEL); left off here so the
    # script runs unchanged on single-TC v5e/v6e.

    # TODO(synk): continuous-action branch (2*action_size head, chunk + clamp of
    # log_std; the PyTorch module returns only `mean`) — same kernel with a
    # 2*A-wide head followed by slicing the first A columns.

    print("KERNEL_OK")
</pallas_src>

<mosaic_0001>
module attributes {stable_mosaic.version = 11 : i64} {
  func.func @dqn_forward_kernel(%arg0: i32, %arg1: memref<8x8xf32, #tpu.memory_space<vmem>>, %arg2: memref<8x128xf32, #tpu.memory_space<vmem>>, %arg3: memref<1x128xf32, #tpu.memory_space<vmem>>, %arg4: memref<128x128xf32, #tpu.memory_space<vmem>>, %arg5: memref<1x128xf32, #tpu.memory_space<vmem>>, %arg6: memref<128x4xf32, #tpu.memory_space<vmem>>, %arg7: memref<1x4xf32, #tpu.memory_space<vmem>>, %arg8: memref<8x4xf32, #tpu.memory_space<vmem>>) attributes {dimension_semantics = [#tpu.dimension_semantics<parallel>], iteration_bounds = array<i64: 1>, scalar_prefetch = 0 : i64, scratch_operands = 0 : i64, tpu.core_type = #tpu.core_type<tc>, window_params = [{transform_indices = @transform_0, window_bounds = array<i64: 8, 8>}, {pipeline_mode = #tpu.pipeline_mode<synchronous>, transform_indices = @transform_1, window_bounds = array<i64: 8, 128>}, {pipeline_mode = #tpu.pipeline_mode<synchronous>, transform_indices = @transform_2, window_bounds = array<i64: 1, 128>}, {pipeline_mode = #tpu.pipeline_mode<synchronous>, transform_indices = @transform_3, window_bounds = array<i64: 128, 128>}, {pipeline_mode = #tpu.pipeline_mode<synchronous>, transform_indices = @transform_4, window_bounds = array<i64: 1, 128>}, {pipeline_mode = #tpu.pipeline_mode<synchronous>, transform_indices = @transform_5, window_bounds = array<i64: 128, 4>}, {pipeline_mode = #tpu.pipeline_mode<synchronous>, transform_indices = @transform_6, window_bounds = array<i64: 1, 4>}, {transform_indices = @transform_7, window_bounds = array<i64: 8, 4>}]} {
    %c0 = arith.constant 0 : index
    %c0_0 = arith.constant 0 : index
    %0 = vector.load %arg1[%c0, %c0_0] : memref<8x8xf32, #tpu.memory_space<vmem>>, vector<8x8xf32>
    %c0_1 = arith.constant 0 : index
    %c0_2 = arith.constant 0 : index
    %1 = vector.load %arg2[%c0_1, %c0_2] : memref<8x128xf32, #tpu.memory_space<vmem>>, vector<8x128xf32>
    %cst = arith.constant dense<0.000000e+00> : vector<8x128xf32>
    %2 = tpu.matmul %0, %1, %cst {dimension_numbers = #tpu.dot_dimension_numbers<[1], [0], [0], [1], [0, 0, 1, 1], [], []>} : vector<8x8xf32>, vector<8x128xf32>, vector<8x128xf32> -> vector<8x128xf32>
    %c0_3 = arith.constant 0 : index
    %c0_4 = arith.constant 0 : index
    %3 = vector.load %arg3[%c0_3, %c0_4] : memref<1x128xf32, #tpu.memory_space<vmem>>, vector<1x128xf32>
    %4 = vector.broadcast %3 : vector<1x128xf32> to vector<8x128xf32>
    %5 = arith.addf %2, %4 : vector<8x128xf32>
    %cst_5 = arith.constant 0.000000e+00 : f32
    %6 = vector.broadcast %cst_5 : f32 to vector<8x128xf32>
    %7 = arith.maximumf %5, %6 : vector<8x128xf32>
    %c0_6 = arith.constant 0 : index
    %c0_7 = arith.constant 0 : index
    %8 = vector.load %arg4[%c0_6, %c0_7] : memref<128x128xf32, #tpu.memory_space<vmem>>, vector<128x128xf32>
    %cst_8 = arith.constant dense<0.000000e+00> : vector<8x128xf32>
    %9 = tpu.matmul %7, %8, %cst_8 {dimension_numbers = #tpu.dot_dimension_numbers<[1], [0], [0], [1], [0, 0, 1, 1], [], []>} : vector<8x128xf32>, vector<128x128xf32>, vector<8x128xf32> -> vector<8x128xf32>
    %c0_9 = arith.constant 0 : index
    %c0_10 = arith.constant 0 : index
    %10 = vector.load %arg5[%c0_9, %c0_10] : memref<1x128xf32, #tpu.memory_space<vmem>>, vector<1x128xf32>
    %11 = vector.broadcast %10 : vector<1x128xf32> to vector<8x128xf32>
    %12 = arith.addf %9, %11 : vector<8x128xf32>
    %cst_11 = arith.constant 0.000000e+00 : f32
    %13 = vector.broadcast %cst_11 : f32 to vector<8x128xf32>
    %14 = arith.maximumf %12, %13 : vector<8x128xf32>
    %c0_12 = arith.constant 0 : index
    %c0_13 = arith.constant 0 : index
    %15 = vector.load %arg6[%c0_12, %c0_13] : memref<128x4xf32, #tpu.memory_space<vmem>>, vector<128x4xf32>
    %cst_14 = arith.constant dense<0.000000e+00> : vector<8x4xf32>
    %16 = tpu.matmul %14, %15, %cst_14 {dimension_numbers = #tpu.dot_dimension_numbers<[1], [0], [0], [1], [0, 0, 1, 1], [], []>} : vector<8x128xf32>, vector<128x4xf32>, vector<8x4xf32> -> vector<8x4xf32>
    %c0_15 = arith.constant 0 : index
    %c0_16 = arith.constant 0 : index
    %17 = vector.load %arg7[%c0_15, %c0_16] : memref<1x4xf32, #tpu.memory_space<vmem>>, vector<1x4xf32>
    %18 = vector.broadcast %17 : vector<1x4xf32> to vector<8x4xf32>
    %19 = arith.addf %16, %18 : vector<8x4xf32>
    %c0_17 = arith.constant 0 : index
    %c0_18 = arith.constant 0 : index
    %20 = vector.load %arg8[%c0_17, %c0_18] : memref<8x4xf32, #tpu.memory_space<vmem>>, vector<8x4xf32>
    tpu.vector_store %arg8[%c0_17, %c0_18], %19 {strides = array<i32>} : memref<8x4xf32, #tpu.memory_space<vmem>>, vector<8x4xf32>,
    return
  }
  func.func @transform_0(%arg0: i32) -> (i32, i32) {
    %c0_i32 = arith.constant 0 : i32
    %c0_i32_0 = arith.constant 0 : i32
    return %arg0, %c0_i32 : i32, i32
  }
  func.func @transform_1(%arg0: i32) -> (i32, i32) {
    %c0_i32 = arith.constant 0 : i32
    %c0_i32_0 = arith.constant 0 : i32
    %c0_i32_1 = arith.constant 0 : i32
    return %c0_i32, %c0_i32_0 : i32, i32
  }
  func.func @transform_2(%arg0: i32) -> (i32, i32) {
    %c0_i32 = arith.constant 0 : i32
    %c0_i32_0 = arith.constant 0 : i32
    %c0_i32_1 = arith.constant 0 : i32
    return %c0_i32, %c0_i32_0 : i32, i32
  }
  func.func @transform_3(%arg0: i32) -> (i32, i32) {
    %c0_i32 = arith.constant 0 : i32
    %c0_i32_0 = arith.constant 0 : i32
    %c0_i32_1 = arith.constant 0 : i32
    return %c0_i32, %c0_i32_0 : i32, i32
  }
  func.func @transform_4(%arg0: i32) -> (i32, i32) {
    %c0_i32 = arith.constant 0 : i32
    %c0_i32_0 = arith.constant 0 : i32
    %c0_i32_1 = arith.constant 0 : i32
    return %c0_i32, %c0_i32_0 : i32, i32
  }
  func.func @transform_5(%arg0: i32) -> (i32, i32) {
    %c0_i32 = arith.constant 0 : i32
    %c0_i32_0 = arith.constant 0 : i32
    %c0_i32_1 = arith.constant 0 : i32
    return %c0_i32, %c0_i32_0 : i32, i32
  }
  func.func @transform_6(%arg0: i32) -> (i32, i32) {
    %c0_i32 = arith.constant 0 : i32
    %c0_i32_0 = arith.constant 0 : i32
    %c0_i32_1 = arith.constant 0 : i32
    return %c0_i32, %c0_i32_0 : i32, i32
  }
  func.func @transform_7(%arg0: i32) -> (i32, i32) {
    %c0_i32 = arith.constant 0 : i32
    %c0_i32_0 = arith.constant 0 : i32
    return %arg0, %c0_i32 : i32, i32
  }
}

</mosaic_0001>

<bundles_post_ra>
// kernel: dqn_forward.1
= control target key start
LH: loop header
LB: loop body
LE: loop exit
PB: predicated region body
PF: predicated region fallthrough
CT: control target
= control target key end

     0   :  { %vm35_vm0 = vcmask 64512   ;;  %v469_v0 = vmov 0.0   ;;  %vm470_vm1 = vmmov 0   ;;  %v471_v4 = vmov 0.0|0.0   ;;  %s642_s1 = inlined_call_operand.vmem [shape: f32[8,128], index: 1, kind: input, shape index: {}]   ;;  %s643_s0 = inlined_call_operand.vmem [shape: f32[8,8], index: 0, kind: input, shape index: {}]   ;;  %s644_s3 = inlined_call_operand.vmem [shape: f32[128,128], index: 3, kind: input, shape index: {}]   ;;  %s645_s5 = inlined_call_operand.vmem [shape: f32[128,4], index: 5, kind: input, shape index: {}]   ;;  %s646_s2 = inlined_call_operand.vmem [shape: f32[1,128], index: 2, kind: input, shape index: {}]   ;;  %s647_s4 = inlined_call_operand.vmem [shape: f32[1,128], index: 4, kind: input, shape index: {}]   ;;  %s648_s6 = inlined_call_operand.vmem [shape: f32[1,4], index: 6, kind: input, shape index: {}]   ;;  %s649_s7 = inlined_call_operand.vmem [shape: f32[8,4], index: 7, kind: output, shape index: {}]  }
   0x1   :  { %343 = vmatprep.subr.mxu0 %v469_v0  ;;  %v27_v1 = vld [vmem:[%s642_s1] sm:$0xff]  ;;  %345 = vmatprep.mubr.msk.f32.mxu0 %vm470_vm1, %v469_v0  ;;  %v111_v5 = vld [vmem:[%s644_s3 + $0x8] sm:$0xff]  ;;  %v112_v6 = vld [vmem:[%s644_s3 + $0x10] sm:$0xff]  ;;  %vm297_vm2 = vcmask 31744  }
   0x2   :  { %v26_v2 = vld [vmem:[%s643_s0] sm:$0xff]  ;;  %344 = vmatpush3.msra.mxu0 %v27_v1  ;;  %418 = vmatprep.subr.bf16.mxu1 %v471_v4  ;;  %v113_v7 = vld [vmem:[%s644_s3 + $0x18] sm:$0xff]  ;;  %v115_v11 = vld [vmem:[%s644_s3 + $0x28] sm:$0xff] }
   0x3   :  { %v110_v3 = vld [vmem:[%s644_s3] sm:$0xff]  ;;  %346 = vmatmul.mubr.msk.f32.vlgmr.msra.gmra.mrb[0].mxu0 %vm35_vm0, %v26_v2  ;;  %380 = vmatprep.mubr.msk.f32.mxu1 %vm470_vm1, %v469_v0  ;;  %v422_v9 = vpack.c.bf16 %v113_v7, %v112_v6  ;;  %v116_v13 = vld [vmem:[%s644_s3 + $0x30] sm:$0xff]  ;;  %v117_v14 = vld [vmem:[%s644_s3 + $0x38] sm:$0xff] }
   0x4   :  { %v419_v8 = vpack.c.bf16 %v111_v5, %v110_v3  ;;  %442 = vmatprep.subr.bf16.mxu0 %v471_v4  ;;  %415 = vmatprep.mubr.msk.f32.mxu0 %vm470_vm1, %v469_v0  ;;  %v114_v10 = vld [vmem:[%s644_s3 + $0x20] sm:$0xff]  ;;  %v428_v15 = vpack.c.bf16 %v117_v14, %v116_v13  ;;  %v119_v17 = vld [vmem:[%s644_s3 + $0x48] sm:$0xff]  ;;  %v120_v19 = vld [vmem:[%s644_s3 + $0x50] sm:$0xff] }
   0x5   :  { %v425_v12 = vpack.c.bf16 %v115_v11, %v114_v10  ;;  %v118_v16 = vld [vmem:[%s644_s3 + $0x40] sm:$0xff]  ;;  %v121_v20 = vld [vmem:[%s644_s3 + $0x58] sm:$0xff]  ;;  %v123_v23 = vld [vmem:[%s644_s3 + $0x68] sm:$0xff] }
   0x6   :  { %420 = vmatpush3.bf16.msra.mxu1 %v419_v8  ;;  %v431_v18 = vpack.c.bf16 %v119_v17, %v118_v16  ;;  %v434_v21 = vpack.c.bf16 %v121_v20, %v120_v19  ;;  %v122_v22 = vld [vmem:[%s644_s3 + $0x60] sm:$0xff]  ;;  %v124_v25 = vld [vmem:[%s644_s3 + $0x70] sm:$0xff]  ;;  %v125_v26 = vld [vmem:[%s644_s3 + $0x78] sm:$0xff] }
   0x7   :  { %421 = vmatprep.subr.bf16.mxu1 %v471_v4  ;;  %v437_v24 = vpack.c.bf16 %v123_v23, %v122_v22  ;;  %v440_v27 = vpack.c.bf16 %v125_v26, %v124_v25  ;;  %v204_v28 = vld [vmem:[%s645_s5] sm:$0xff]  ;;  %v205_v29 = vld [vmem:[%s645_s5 + $0x8] sm:$0xff]  ;;  %v206_v30 = vld [vmem:[%s645_s5 + $0x10] sm:$0xff] }
   0x8   :  { %v443_v31 = vpack.c.bf16 %v205_v29, %v204_v28  ;;  %v207_v32 = vld [vmem:[%s645_s5 + $0x18] sm:$0xff]  ;;  %v208_v34 = vld [vmem:[%s645_s5 + $0x20] sm:$0xff]  ;;  %v209_v35 = vld [vmem:[%s645_s5 + $0x28] sm:$0xff] }
   0x9   :  { %v446_v33 = vpack.c.bf16 %v207_v32, %v206_v30  ;;  %v449_v36 = vpack.c.bf16 %v209_v35, %v208_v34  ;;  %v210_v37 = vld [vmem:[%s645_s5 + $0x30] sm:$0xff]  ;;  %v211_v38 = vld [vmem:[%s645_s5 + $0x38] sm:$0xff]  ;;  %v212_v40 = vld [vmem:[%s645_s5 + $0x40] sm:$0xff] }
   0xa   :  { %423 = vmatpush3.bf16.msra.mxu1 %v422_v9  ;;  %444 = vmatpush3.bf16.msra.mxu0 %v443_v31  ;;  %v452_v39 = vpack.c.bf16 %v211_v38, %v210_v37  ;;  %v213_v41 = vld [vmem:[%s645_s5 + $0x48] sm:$0xff]  ;;  %v214_v43 = vld [vmem:[%s645_s5 + $0x50] sm:$0xff]  ;;  %v215_v44 = vld [vmem:[%s645_s5 + $0x58] sm:$0xff] }
   0xb   :  { %424 = vmatprep.subr.bf16.mxu1 %v471_v4  ;;  %445 = vmatprep.subr.bf16.mxu0 %v471_v4  ;;  %v455_v42 = vpack.c.bf16 %v213_v41, %v212_v40  ;;  %v458_v45 = vpack.c.bf16 %v215_v44, %v214_v43  ;;  %v216_v46 = vld [vmem:[%s645_s5 + $0x60] sm:$0xff]  ;;  %v217_v47 = vld [vmem:[%s645_s5 + $0x68] sm:$0xff]  ;;  %v218_v54 = vld [vmem:[%s645_s5 + $0x70] sm:$0xff] }
   0xc   :  { %v461_v48 = vpack.c.bf16 %v217_v47, %v216_v46  ;;  %v303_v49 = vld [vmem:[%s646_s2] ss:$0 sm:$0xff]  ;;  %v219_v55 = vld [vmem:[%s645_s5 + $0x78] sm:$0xff] }
   0xd   :  { %v464_v56 = vpack.c.bf16 %v219_v55, %v218_v54  ;;  %v305_v57 = vld [vmem:[%s647_s4] ss:$0 sm:$0xff] }
   0xe   :  { %426 = vmatpush3.bf16.msra.mxu1 %v425_v12  ;;  %447 = vmatpush3.bf16.msra.mxu0 %v446_v33  ;;  %v306_v62 = vld [vmem:[%s648_s6] ss:$0 sm:$0xff] }
   0xf   :  { %427 = vmatprep.subr.bf16.mxu1 %v471_v4  ;;  %448 = vmatprep.subr.bf16.mxu0 %v471_v4 }
  0x12   :  { %429 = vmatpush3.bf16.msra.mxu1 %v428_v15  ;;  %450 = vmatpush3.bf16.msra.mxu0 %v449_v36 }
  0x13   :  { %430 = vmatprep.subr.bf16.mxu1 %v471_v4  ;;  %451 = vmatprep.subr.bf16.mxu0 %v471_v4 }
  0x16   :  { %432 = vmatpush3.bf16.msra.mxu1 %v431_v18  ;;  %453 = vmatpush3.bf16.msra.mxu0 %v452_v39 }
  0x17   :  { %433 = vmatprep.subr.bf16.mxu1 %v471_v4  ;;  %454 = vmatprep.subr.bf16.mxu0 %v471_v4 }
  0x1a   :  { %435 = vmatpush3.bf16.msra.mxu1 %v434_v21  ;;  %456 = vmatpush3.bf16.msra.mxu0 %v455_v42 }
  0x1b   :  { %436 = vmatprep.subr.bf16.mxu1 %v471_v4  ;;  %457 = vmatprep.subr.bf16.mxu0 %v471_v4 }
  0x1e   :  { %438 = vmatpush3.bf16.msra.mxu1 %v437_v24  ;;  %459 = vmatpush3.bf16.msra.mxu0 %v458_v45 }
  0x1f   :  { %439 = vmatprep.subr.bf16.mxu1 %v471_v4  ;;  %460 = vmatprep.subr.bf16.mxu0 %v471_v4 }
  0x22   :  { %441 = vmatpush3.bf16.msra.mxu1 %v440_v27  ;;  %462 = vmatpush3.bf16.msra.mxu0 %v461_v48 }
  0x23   :  { %463 = vmatprep.subr.bf16.mxu0 %v471_v4 }
  0x26   :  { %465 = vmatpush3.bf16.msra.mxu0 %v464_v56 }
  0xd6   :  { %v105_v50 = vpop.f32.mrb[0].mxu0 }
  0xd7   :  { %v106_v51 = vadd.f32 %v303_v49, %v105_v50  ;;  %v347_v52 = vpop.f32.mrb[1].mxu0 }
  0xd9   :  { %v109_v53 = vmax.f32 %v106_v51, 0.0 }
  0xdb   :  { %381 = vmatmul.mubr.f32.vlgmr.msra.gmra.mrb[0].mxu1 %v109_v53 }
 0x1ae   :  { %v199_v58 = vpop.f32.mrb[0].mxu1 }
 0x1af   :  { %v200_v59 = vadd.f32 %v305_v57, %v199_v58  ;;  %v382_v60 = vpop.f32.mrb[1].mxu1 }
 0x1b1   :  { %v203_v61 = vmax.f32 %v200_v59, 0.0 }
 0x1b3   :  { %416 = vmatmul.mubr.f32.vlgmr.msra.gmra.mrb[2].mxu0 %v203_v61 }
 0x286   :  { %v293_v63 = vpop.f32.mrb[2].mxu0 }
 0x287   :  { %v294_v0 = vadd.f32 %v306_v62, %v293_v63  ;;  %v417_v1 = vpop.f32.mrb[3].mxu0 }
 0x289   :  { %298 = vst.msk [vmem:[%s649_s7] sm:$0xff] %vm297_vm2, %v294_v0 }

</bundles_post_ra>
